<compile_context>
chip_gen: v7x
topology: tpu7x:2x2x1
jax: 0.10.0
libtpu: 0.0.40
codegen_flags: <defaults>
</compile_context>

<pallas_src>
import jax
import jax.numpy as jnp
from jax import lax
from jax.experimental import pallas as pl
from jax.experimental.pallas import tpu as pltpu


def mlp_kernel(x_ref, w1_ref, b1_ref, w2_ref, b2_ref, o_ref):
    # x:(TB,16) f32 | w1:(30,16) bf16 | b1:(30,1) f32 | w2:(30,1) f32
    # b2:(1,1) f32 (SMEM) | o:(1,TB) f32
    xb = x_ref[...].astype(jnp.bfloat16)                  # cheap VPU cast, hidden under DMA
    # NT matmul: contract the 16-wide feature dim of both operands so the
    # result lands directly in (30, TB) with batch on the lane axis.
    h = lax.dot_general(
        w1_ref[...], xb,
        dimension_numbers=(((1,), (1,)), ((), ())),
        preferred_element_type=jnp.float32)               # MXU: (30, TB) f32
    h = jnp.maximum(h + b1_ref[...], 0.0)                 # bias + ReLU in f32 (VPU)
    # Layer 2 (out_features == 1): keep it off the MXU -- VPU multiply by the
    # (30, 1) weight column + cross-sublane (XLU) reduce.
    y = jnp.sum(h * w2_ref[...], axis=0, keepdims=True)   # (1, TB)
    o_ref[...] = (y + b2_ref[0, 0]).astype(o_ref.dtype)


def _pick_tile(batch, max_tb):
    """128-aligned batch tile, as large as possible, but >= 2 grid steps when
    the batch allows (so the parallel axis shards across v7x's 2 TensorCores)."""
    bp128 = max(pl.cdiv(batch, 128), 1) * 128
    tb = min(max_tb, bp128)
    if bp128 >= 256:
        tb = min(tb, pl.cdiv(pl.cdiv(bp128, 2), 128) * 128)
    return tb


def net_forward(x, w1, b1, w2, b2, *, max_tb=32768):
    """Forward pass of Net.

    Args (PyTorch layouts):
      x:  (B, 16) f32
      w1: (30, 16), b1: (30,)   -- nn.Linear(16, 30)
      w2: (1, 30),  b2: (1,)    -- nn.Linear(30, 1)
    Returns: (B, 1) f32
    """
    B, f_in = x.shape
    hidden = w1.shape[0]

    tb = _pick_tile(B, max_tb)
    grid = (pl.cdiv(B, tb),)

    # Tiny parameter plumbing only (no pass over x).
    w1b = w1.astype(jnp.bfloat16)                        # (30, 16)
    b1c = b1.reshape(hidden, 1).astype(jnp.float32)      # (30, 1)
    w2c = w2.reshape(hidden, 1).astype(jnp.float32)      # (30, 1) column
    b2c = b2.reshape(1, 1).astype(jnp.float32)           # scalar -> SMEM

    cost = pl.CostEstimate(
        flops=2 * B * f_in * hidden + 4 * B * hidden,
        transcendentals=0,
        bytes_accessed=B * f_in * 4 + B * 4 + hidden * f_in * 2 + hidden * 12 + 4,
    )

    out_row = pl.pallas_call(
        mlp_kernel,
        out_shape=jax.ShapeDtypeStruct((1, B), jnp.float32),
        grid=grid,
        in_specs=[
            pl.BlockSpec((tb, f_in), lambda i: (i, 0)),       # x tile, pipelined
            pl.BlockSpec((hidden, f_in), lambda i: (0, 0)),   # VMEM-resident W1
            pl.BlockSpec((hidden, 1), lambda i: (0, 0)),      # b1 column
            pl.BlockSpec((hidden, 1), lambda i: (0, 0)),      # w2 column
            pl.BlockSpec(memory_space=pltpu.SMEM),            # b2 scalar
        ],
        out_specs=pl.BlockSpec((1, tb), lambda i: (0, i)),    # lane-dense output
        compiler_params=pltpu.CompilerParams(
            dimension_semantics=("parallel",)),
        cost_estimate=cost,
    )(x, w1b, b1c, w2c, b2c)

    # (1, B) row -> (B, 1): leading dim is 1, so this is a free reshape.
    return out_row.reshape(B, 1)


def init_params(key):
    """Deterministic init mimicking PyTorch nn.Linear default:
    U(-1/sqrt(fan_in), 1/sqrt(fan_in)); weights stored in PyTorch (out, in)."""
    k1, k2, k3, k4 = jax.random.split(key, 4)
    fan1, fan2 = 16, 30
    bound1 = 1.0 / (fan1 ** 0.5)
    bound2 = 1.0 / (fan2 ** 0.5)
    w1 = jax.random.uniform(k1, (30, 16), jnp.float32, -bound1, bound1)
    b1 = jax.random.uniform(k2, (30,), jnp.float32, -bound1, bound1)
    w2 = jax.random.uniform(k3, (1, 30), jnp.float32, -bound2, bound2)
    b2 = jax.random.uniform(k4, (1,), jnp.float32, -bound2, bound2)
    return w1, b1, w2, b2


def reference_forward(x, w1, b1, w2, b2):
    # Mirrors the kernel's numerics: bf16 MXU inputs, f32 accumulation.
    xb = x.astype(jnp.bfloat16).astype(jnp.float32)
    w1b = w1.astype(jnp.bfloat16).astype(jnp.float32)
    h = jnp.maximum(
        jnp.dot(xb, w1b.T, precision=jax.lax.Precision.HIGHEST) + b1, 0.0)
    return jnp.dot(h, w2.T, precision=jax.lax.Precision.HIGHEST) + b2


if __name__ == "__main__":
    key = jax.random.PRNGKey(0)
    kx, kp = jax.random.split(key)

    # Small batch that still exercises a 2-step grid (tb=128) and a partial
    # (masked) last block: 200 = 128 + 72.
    B = 200
    x = jax.random.normal(kx, (B, 16), jnp.float32)
    w1, b1, w2, b2 = init_params(kp)

    out = net_forward(x, w1, b1, w2, b2)
    out = jax.block_until_ready(out)

    ref = reference_forward(x, w1, b1, w2, b2)
    assert out.shape == (B, 1)
    assert jnp.allclose(out, ref, atol=1e-3, rtol=1e-3)

    print("KERNEL_OK")
</pallas_src>

<mosaic_0001>
module attributes {stable_mosaic.version = 11 : i64} {
  func.func @mlp_kernel(%arg0: i32, %arg1: memref<128x16xf32, #tpu.memory_space<vmem>>, %arg2: memref<30x16xbf16, #tpu.memory_space<vmem>>, %arg3: memref<30x1xf32, #tpu.memory_space<vmem>>, %arg4: memref<30x1xf32, #tpu.memory_space<vmem>>, %arg5: memref<1x1xf32, #tpu.memory_space<smem>>, %arg6: memref<1x128xf32, #tpu.memory_space<vmem>>) attributes {dimension_semantics = [#tpu.dimension_semantics<parallel>], iteration_bounds = array<i64: 2>, scalar_prefetch = 0 : i64, scratch_operands = 0 : i64, tpu.core_type = #tpu.core_type<tc>, window_params = [{transform_indices = @transform_0, window_bounds = array<i64: 128, 16>}, {pipeline_mode = #tpu.pipeline_mode<synchronous>, transform_indices = @transform_1, window_bounds = array<i64: 30, 16>}, {pipeline_mode = #tpu.pipeline_mode<synchronous>, transform_indices = @transform_2, window_bounds = array<i64: 30, 1>}, {pipeline_mode = #tpu.pipeline_mode<synchronous>, transform_indices = @transform_3, window_bounds = array<i64: 30, 1>}, {transform_indices = @transform_4, window_bounds = array<i64: 1, 1>}, {transform_indices = @transform_5, window_bounds = array<i64: 1, 128>}]} {
    %c0 = arith.constant 0 : index
    %c0_0 = arith.constant 0 : index
    %0 = vector.load %arg1[%c0, %c0_0] : memref<128x16xf32, #tpu.memory_space<vmem>>, vector<128x16xf32>
    %1 = arith.truncf %0 : vector<128x16xf32> to vector<128x16xbf16>
    %c0_1 = arith.constant 0 : index
    %c0_2 = arith.constant 0 : index
    %2 = vector.load %arg2[%c0_1, %c0_2] : memref<30x16xbf16, #tpu.memory_space<vmem>>, vector<30x16xbf16>
    %cst = arith.constant dense<0.000000e+00> : vector<30x128xf32>
    %3 = tpu.matmul %2, %1, %cst {dimension_numbers = #tpu.dot_dimension_numbers<[1], [1], [0], [0], [0, 0, 1, 0], [], []>} : vector<30x16xbf16>, vector<128x16xbf16>, vector<30x128xf32> -> vector<30x128xf32>
    %c0_3 = arith.constant 0 : index
    %c0_4 = arith.constant 0 : index
    %4 = vector.load %arg3[%c0_3, %c0_4] : memref<30x1xf32, #tpu.memory_space<vmem>>, vector<30x1xf32>
    %5 = vector.broadcast %4 : vector<30x1xf32> to vector<30x128xf32>
    %6 = arith.addf %3, %5 : vector<30x128xf32>
    %cst_5 = arith.constant 0.000000e+00 : f32
    %7 = vector.broadcast %cst_5 : f32 to vector<30x128xf32>
    %8 = arith.maximumf %6, %7 : vector<30x128xf32>
    %c0_6 = arith.constant 0 : index
    %c0_7 = arith.constant 0 : index
    %9 = vector.load %arg4[%c0_6, %c0_7] : memref<30x1xf32, #tpu.memory_space<vmem>>, vector<30x1xf32>
    %10 = vector.broadcast %9 : vector<30x1xf32> to vector<30x128xf32>
    %11 = arith.mulf %8, %10 : vector<30x128xf32>
    %cst_8 = arith.constant dense<0.000000e+00> : vector<128xf32>
    %12 = vector.multi_reduction <add>, %11, %cst_8 [0] : vector<30x128xf32> to vector<128xf32>
    %13 = vector.shape_cast %12 : vector<128xf32> to vector<1x128xf32>
    %c0_9 = arith.constant 0 : index
    %c0_10 = arith.constant 0 : index
    %14 = memref.load %arg5[%c0_9, %c0_10] : memref<1x1xf32, #tpu.memory_space<smem>>
    %15 = vector.broadcast %14 : f32 to vector<1x128xf32>
    %16 = arith.addf %13, %15 : vector<1x128xf32>
    %c0_11 = arith.constant 0 : index
    %c0_12 = arith.constant 0 : index
    %17 = vector.load %arg6[%c0_11, %c0_12] : memref<1x128xf32, #tpu.memory_space<vmem>>, vector<1x128xf32>
    tpu.vector_store %arg6[%c0_11, %c0_12], %16 {strides = array<i32>} : memref<1x128xf32, #tpu.memory_space<vmem>>, vector<1x128xf32>,
    return
  }
  func.func @transform_0(%arg0: i32) -> (i32, i32) {
    %c0_i32 = arith.constant 0 : i32
    %c0_i32_0 = arith.constant 0 : i32
    return %arg0, %c0_i32 : i32, i32
  }
  func.func @transform_1(%arg0: i32) -> (i32, i32) {
    %c0_i32 = arith.constant 0 : i32
    %c0_i32_0 = arith.constant 0 : i32
    %c0_i32_1 = arith.constant 0 : i32
    return %c0_i32, %c0_i32_0 : i32, i32
  }
  func.func @transform_2(%arg0: i32) -> (i32, i32) {
    %c0_i32 = arith.constant 0 : i32
    %c0_i32_0 = arith.constant 0 : i32
    %c0_i32_1 = arith.constant 0 : i32
    return %c0_i32, %c0_i32_0 : i32, i32
  }
  func.func @transform_3(%arg0: i32) -> (i32, i32) {
    %c0_i32 = arith.constant 0 : i32
    %c0_i32_0 = arith.constant 0 : i32
    %c0_i32_1 = arith.constant 0 : i32
    return %c0_i32, %c0_i32_0 : i32, i32
  }
  func.func @transform_4(%arg0: i32) -> (i32, i32) {
    %c0_i32 = arith.constant 0 : i32
    %c0_i32_0 = arith.constant 0 : i32
    %c0_i32_1 = arith.constant 0 : i32
    return %c0_i32, %c0_i32_0 : i32, i32
  }
  func.func @transform_5(%arg0: i32) -> (i32, i32) {
    %c0_i32 = arith.constant 0 : i32
    %c0_i32_0 = arith.constant 0 : i32
    return %c0_i32, %arg0 : i32, i32
  }
}

</mosaic_0001>

<bundles_post_ra>
// kernel: tpu_custom_call.1
= control target key start
LH: loop header
LB: loop body
LE: loop exit
PB: predicated region body
PF: predicated region fallthrough
CT: control target
= control target key end

     0   :  { %s862_s0 = inlined_call_operand.vmem [shape: f32[200,16], index: 0, kind: input, shape index: {}]   ;;  %s863_s1 = inlined_call_operand.vmem [shape: bf16[30,16], index: 1, kind: input, shape index: {}]   ;;  %s864_s2 = inlined_call_operand.vmem [shape: f32[30,1], index: 2, kind: input, shape index: {}]   ;;  %s865_s3 = inlined_call_operand.vmem [shape: f32[30,1], index: 3, kind: input, shape index: {}]   ;;  %s866_s4 = inlined_call_operand.<no memory space> [shape: f32[1,1], index: 4, kind: input, shape index: {}]   ;;  %s867_s5 = inlined_call_operand.hbm [shape: f32[1,200], index: 5, kind: output, shape index: {}]  }
   0x1   :  { %10 = sst [smem:[#allocation2]] %s866_s4 }
   0x2   :  { %11 = vsyncpa [#allocation4], 0 }
   0x3   :  { %13 = vsyncpa [#allocation4 + $0x1], 0  ;;  %s697_s20 = smov 0   ;;  %s699_s21 = smov 0  }
   0x4   :  { %s701_s22 = smov 0   ;;  %s703_s23 = smov 0  }
   0x5 LB: > { %s502_s4 = sadd.s32 4294967295, %s660_s23   ;;  %s503_s24 = sadd.s32 4294967294, %s660_s23   ;;  %s660_s23 = sphi %s703_s23, %s873_s23   ;;  %s656_s22 = sphi %s701_s22, %s872_s22   ;;  %s652_s21 = sphi %s699_s21, %s871_s21   ;;  %s648_s20 = sphi %s697_s20, %s870_s20  }
   0x6   : > { %s720_s25 = sadd.s32 1, %s660_s23   ;;  %s136_s26 = sadd.s32 1, %s656_s22 }
   0x7   : > { %s133_s27 = ssub.s32 %s660_s23, %s720_s25  ;;  %p146_p0 = scmp.ne.s32.totalorder %s656_s22, %s652_s21 }
   0x8   : > { %p134_p1 = scmp.eq.s32.totalorder %s133_s27, 0  ;;  %p147_p2 = scmp.eq.s32.totalorder %s502_s4, 1 }
   0x9   : > { %p152_p3 = scmp.ne.s32.totalorder %s652_s21, %s648_s20  ;;  %p153_p4 = scmp.eq.s32.totalorder %s503_s24, 1 }
   0xa   : > { %s730_s28 = scalar_select %p134_p1, %s656_s22, %s136_s26  }
   0xb   : > { %p732_p5 = por %p147_p2, %p146_p0  ;;  %p736_p6 = por %p153_p4, %p152_p3 }
   0xc   : > { %p506_p7 = scmp.ge.s32.totalorder %s660_s23, 1  ;;  %p200_p8 = scmp.lt.s32.totalorder %s660_s23, 3 }
   0xe   : > { %p201_p9 = pnand %p506_p7, %p200_p8 }
   0xf   : > { %s742_s6 = sshll.u32 (!%p201_p9), %s502_s4, 4  ;;  %v596_v0 = vld [vmem:[%s863_s1] sm:$0xff] (!%p201_p9)   ;;  %vm308_vm0 = vcmask (!%p201_p9), 130048   ;;  %v276_v2 = vld [vmem:[%s864_s2 + $0x10] sm:$0xff] (!%p201_p9)  ;;  %v662_v3 = vmov (!%p201_p9), 0   ;;  %v275_v4 = vld [vmem:[%s864_s2 + $0x8] sm:$0xff] (!%p201_p9) }
  0x10   : > { %204 = sbr.rel (%p201_p9) target bundleno = 349 (0x15d), region = 40  ;;  %p236_p10 = scmp.lt.s32.totalorder (!%p201_p9), %s742_s6, 24  ;;  %v274_v1 = vld [vmem:[%s864_s2] sm:$0xff] (!%p201_p9)  ;;  %542 = vmatprep.mubr.msk.bf16.mxu0 (!%p201_p9), %vm308_vm0, %v596_v0  ;;  %594 = vset.pattern.permute.xlu0 (!%p201_p9), %v662_v3  ;;  %v277_v5 = vld [vmem:[%s864_s2 + $0x18] sm:$0x3f] (!%p201_p9)  ;;  %v393_v14 = vld [vmem:[%s865_s3 + $0x8] sm:$0xff] (!%p201_p9) }
  0x11   : > { %595 = vset.pattern.permute.xlu1 (!%p201_p9), %v662_v3  ;;  %280 = vperm.xlu0 (!%p201_p9), %594, %v274_v1   ;;  %v392_v12 = vld [vmem:[%s865_s3] sm:$0xff] (!%p201_p9)  ;;  %v394_v17 = vld [vmem:[%s865_s3 + $0x10] sm:$0xff] (!%p201_p9)  ;;  %v395_v18 = vld [vmem:[%s865_s3 + $0x18] sm:$0x3f] (!%p201_p9)  ;;  %vm422_vm1 = vcmask (!%p201_p9), 1045504   ;;  %s431_s15 = sld [smem:[#allocation2]] (!%p201_p9)  ;;  %s820_s24 = scalar_lea.hbm (!%p201_p9), %s867_s5, %s742_s6 }
  0x12   : > { %290 = vperm.xlu1 (!%p201_p9), %595, %v276_v2   ;;  %v597_v42 = vld [vmem:[%s863_s1 + $0x8] sm:$0x7f] (!%p201_p9)   ;;  %s229_s16 = sand.u32 (!%p201_p9), 1, %s652_s21   ;;  %s663_s7 = smov (!%p201_p9), [#allocation3]  }
  0x13   : > { %s230_s17 = scalar_lea.vmem (!%p201_p9), [#allocation3], %s229_s16  ;;  %s436_s26 = scalar_lea.sflag (!%p201_p9), [#allocation4], %s229_s16 }
  0x14   : > { %s448_s18 = sshll.u32 (!%p201_p9), %s230_s17, 4  ;;  %s602_s8 = sshll.u32 (!%p201_p9), %s663_s7, 4  ;;  %s822_s18 = int_to_ptr.vmem [resolvable:$true] %s448_s18  ;;  %s603_s8 = int_to_ptr.vmem [resolvable:$false] %s602_s8 }
  0x15   : > { %285 = vperm.xlu0 (!%p201_p9), %594, %v275_v4   ;;  %s598_s27 = scalar_lea.vmem (!%p201_p9), %s822_s18, 16  ;;  %s604_s9 = scalar_lea.vmem (!%p201_p9), %s603_s8, 32 }
  0x16   : > { %295 = vperm.xlu1 (!%p201_p9), %595, %v277_v5   ;;  %p599_p11 = scmp.ne.s32.totalorder (!%p201_p9), %s822_s18, %s598_s27  ;;  %p605_p0 = scmp.lt.s32.totalorder (!%p201_p9), %s822_s18, %s603_s8 }
  0x17   : > { %s237_s13 = scalar_select %p236_p10, %s742_s6, 24 }
  0x18   : > { %p600_p12 = pnand %p599_p11, %p732_p5  ;;  %p606_p1 = scmp.lt.s32.totalorder %s604_s9, %s598_s27 }
  0x19   : > { %s508_s14 = sshll.u32 %s237_s13, 3  ;;  %398 = vperm.xlu0 %594, %v392_v12   ;;  %v432_v12 = vstv %s431_s15 }
  0x1a   : > { %s762_s19 = scalar_lea.vmem %s862_s0, %s508_s14  ;;  %403 = vperm.xlu1 %595, %v393_v14   ;;  %p601_p13 = pneg %p600_p12 }
  0x1b   : > { %v246_v6 = vld [vmem:[%s762_s19] sm:$0xff]  ;;  %v247_v7 = vld [vmem:[%s762_s19 + $0x8] sm:$0xff]  ;;  %v248_v8 = vld [vmem:[%s762_s19 + $0x10] sm:$0xff]  ;;  %p607_p2 = por %p606_p1, %p605_p0 }
  0x1c   : > { %v262_v9 = vpack.c.bf16 %v247_v7, %v246_v6  ;;  %v249_v10 = vld [vmem:[%s762_s19 + $0x18] sm:$0xff]  ;;  %v250_v15 = vld [vmem:[%s762_s19 + $0x20] sm:$0xff]  ;;  %v251_v16 = vld [vmem:[%s762_s19 + $0x28] sm:$0xff] }
  0x1d   : > { %v263_v11 = vpack.c.bf16 %v249_v10, %v248_v8  ;;  %v264_v20 = vpack.c.bf16 %v251_v16, %v250_v15  ;;  %408 = vperm.xlu0 %594, %v394_v17   ;;  %v252_v21 = vld [vmem:[%s762_s19 + $0x30] sm:$0xff]  ;;  %v253_v22 = vld [vmem:[%s762_s19 + $0x38] sm:$0xff]  ;;  %v254_v25 = vld [vmem:[%s762_s19 + $0x40] sm:$0xff]  ;;  %p608_p3 = pnand %p607_p2, %p601_p13 }
  0x1e   : > { %546 = vmatprep.subr.msk.bf16.mxu0 %vm308_vm0, %v262_v9  ;;  %v316_v13 = vsel %vm308_vm0, %v262_v9, 0  ;;  %413 = vperm.xlu1 %595, %v395_v18   ;;  %v265_v24 = vpack.c.bf16 %v253_v22, %v252_v21  ;;  %v255_v26 = vld [vmem:[%s762_s19 + $0x48] sm:$0xff]  ;;  %v256_v29 = vld [vmem:[%s762_s19 + $0x50] sm:$0xff]  ;;  %v257_v30 = vld [vmem:[%s762_s19 + $0x58] sm:$0xff] }
  0x1f   : > { %527 = vmatpush3.bf16.xpose.msra.mxu0 %v316_v13  ;;  %v319_v19 = vsel %vm308_vm0, %v263_v11, 0  ;;  %v322_v23 = vsel %vm308_vm0, %v264_v20, 0  ;;  %v266_v28 = vpack.c.bf16 %v255_v26, %v254_v25  ;;  %v267_v32 = vpack.c.bf16 %v257_v30, %v256_v29  ;;  %v258_v33 = vld [vmem:[%s762_s19 + $0x60] sm:$0xff]  ;;  %v259_v34 = vld [vmem:[%s762_s19 + $0x68] sm:$0xff]  ;;  %v260_v37 = vld [vmem:[%s762_s19 + $0x70] sm:$0xff] }
  0x20   : > { %547 = vmatprep.subr.msk.bf16.mxu0 %vm308_vm0, %v263_v11  ;;  %v325_v27 = vsel %vm308_vm0, %v265_v24, 0  ;;  %v268_v36 = vpack.c.bf16 %v259_v34, %v258_v33  ;;  %v261_v38 = vld [vmem:[%s762_s19 + $0x78] sm:$0xff] }
  0x21   : > { %v328_v31 = vsel %vm308_vm0, %v266_v28, 0  ;;  %v331_v35 = vsel %vm308_vm0, %v267_v32, 0  ;;  %v269_v40 = vpack.c.bf16 %v261_v38, %v260_v37 }
  0x22   : > { %v334_v39 = vsel %vm308_vm0, %v268_v36, 0 }
  0x23   : > { %v337_v41 = vsel %vm308_vm0, %v269_v40, 0 }
  0x27   : > { %529 = vmatpush3.bf16.xpose.msra.mxu0 %v319_v19 }
  0x28   : > { %548 = vmatprep.subr.msk.bf16.mxu0 %vm308_vm0, %v264_v20 }
  0x2f   : > { %531 = vmatpush3.bf16.xpose.msra.mxu0 %v322_v23 }
  0x30   : > { %549 = vmatprep.subr.msk.bf16.mxu0 %vm308_vm0, %v265_v24 }
  0x37   : > { %533 = vmatpush3.bf16.xpose.msra.mxu0 %v325_v27 }
  0x38   : > { %550 = vmatprep.subr.msk.bf16.mxu0 %vm308_vm0, %v266_v28 }
  0x3f   : > { %535 = vmatpush3.bf16.xpose.msra.mxu0 %v328_v31 }
  0x40   : > { %551 = vmatprep.subr.msk.bf16.mxu0 %vm308_vm0, %v267_v32 }
  0x47   : > { %537 = vmatpush3.bf16.xpose.msra.mxu0 %v331_v35 }
  0x48   : > { %552 = vmatprep.subr.msk.bf16.mxu0 %vm308_vm0, %v268_v36 }
  0x4f   : > { %539 = vmatpush3.bf16.xpose.msra.mxu0 %v334_v39 }
  0x50   : > { %553 = vmatprep.subr.msk.bf16.mxu0 %vm308_vm0, %v269_v40 }
  0x57   : > { %541 = vmatpush3.bf16.xpose.msra.mxu0 %v337_v41 }
  0x5e   : > { %543 = vmatmul.mubr.msk.bf16.vlgmr.msra.gmra.mrb[0].mxu0 %vm308_vm0, %v597_v42 }
  0x90   : > { %v281_v44 = vpop.permute.xlu0 %280 }
  0x91   : > { %v291_v43 = vpop.permute.xlu1 %290 }
  0x94   : > { %v286_v46 = vpop.permute.xlu0 %285 }
  0x95   : > { %v296_v45 = vpop.permute.xlu1 %295 }
  0x98   : > { %v399_v53 = vpop.permute.xlu0 %398 }
  0x99   : > { %v404_v49 = vpop.permute.xlu1 %403 }
  0x9c   : > { %v409_v0 = vpop.permute.xlu0 %408 }
  0x9d   : > { %v414_v61 = vpop.permute.xlu1 %413 }
 0x131   : > { %v544_v47 = vpop.f32.mrb[0].mxu0 }
 0x132   : > { %v373_v48 = vpop.f32.mrb[1].mxu0  ;;  %v382_v50 = vadd.f32 %v544_v47, %v291_v43 }
 0x133   : > { %v374_v51 = vadd.f32 %v373_v48, %v281_v44  ;;  %v545_v52 = vpop.f32.mrb[2].mxu0 }
 0x134   : > { %v385_v54 = vadd.f32 %v545_v52, %v296_v45  ;;  %v376_v55 = vpop.f32.mrb[3].mxu0  ;;  %v390_v59 = vmax.f32 %v382_v50, 0.0 }
 0x135   : > { %v388_v56 = vmax.f32 %v374_v51, 0.0  ;;  %v377_v57 = vadd.f32 %v376_v55, %v286_v46 }
 0x136   : > { %v391_v58 = vmax.f32 %v385_v54, 0.0  ;;  %v418_v2 = vmul.f32 %v409_v0, %v390_v59 }
 0x137   : > { %v389_v60 = vmax.f32 %v377_v57, 0.0  ;;  %v416_v62 = vmul.f32 %v399_v53, %v388_v56 }
 0x138   : > { %v419_v1 = vmul.f32 %v414_v61, %v391_v58 }
 0x139   : > { %v417_v63 = vmul.f32 %v404_v49, %v389_v60 }
 0x13a   : > { %v423_v5 = vsel %vm422_vm1, %v419_v1, 0.0 }
 0x13b   : > { %v420_v3 = vadd.f32 %v417_v63, %v416_v62 }
 0x13d   : > { %v421_v4 = vadd.f32 %v420_v3, %v418_v2 }
 0x13f   : > { %v424_v6 = vadd.f32 %v423_v5, %v421_v4 }
 0x141   : > { %v425_v7 = vrot.slane %v424_v6, 4 }
 0x143   : > { %v426_v8 = vadd.f32 %v425_v7, %v424_v6 }
 0x145   : > { %v427_v9 = vrot.slane %v426_v8, 2 }
 0x147   : > { %v428_v10 = vadd.f32 %v427_v9, %v426_v8 }
 0x149   : > { %v429_v11 = vrot.slane %v428_v10, 1 }
 0x14b   : > { %v430_v13 = vadd.f32 %v429_v11, %v428_v10 }
 0x14d   : > { %v433_v14 = vadd.f32 %v432_v12, %v430_v13 }
 0x14f   : > { %434 = vst [vmem:[%s230_s17] sm:$0x1] %v433_v14 }
 0x150   : > { %611 = shalt.err (!%p608_p3)
}
 0x151   : > { %s612_s6 = scalar_lea.hbm %s820_s24, 16  ;;  %s616_s12 = scalar_lea.hbm %s867_s5, 32 }
 0x152   : > { %p613_p4 = scmp.ne.s32.totalorder %s820_s24, %s612_s6  ;;  %p617_p9 = scmp.lt.u32.totalorder %s820_s24, %s867_s5 }
 0x153   : > { %p618_p10 = scmp.lt.u32.totalorder %s616_s12, %s612_s6  ;;  %p620_p12 = scmp.lt.u32.totalorder %s612_s6, %s820_s24 }
 0x154   : > { %p614_p7 = pnand %p613_p4, %p732_p5 }
 0x155   : > { %p619_p11 = por %p618_p10, %p617_p9 }
 0x156   : > { %p615_p8 = pneg %p614_p7 }
 0x157   : > { %p621_p13 = por %p620_p12, %p619_p11 }
 0x159   : > { %p622_p0 = pnand %p621_p13, %p615_p8 }
 0x15b   : > { %625 = shalt.err (!%p622_p0)
}
 0x15c   : > { %554 = dma.vmem_to_hbm [thread:$0]  (%p732_p5), %s822_s18, 16, %s820_s24, %s436_s26  }
 0x15d PF: > { %p560_p1 = scmp.ge.s32.totalorder %s660_s23, 2  ;;  %s460_s15 = sand.u32 1, %s648_s20  }
 0x15e   : > { %s461_s16 = scalar_lea.sflag [#allocation4], %s460_s15 }
 0x15f   : > { %p557_p2 = pnand %p560_p1, %p736_p6 }
 0x161   : > { %643 = dma.done.wait (!%p557_p2), %s461_s16, 16  }
 0x162   : > { %645 = vsyncadd (!%p557_p2), %s461_s16, 4294967280  ;;  %p16_p3 = scmp.ge.s32.totalorder %s720_s25, 4   ;;  %s870_s20 = smov %s652_s21 }
 0x163   : > { %s871_s21 = smov %s656_s22  ;;  %s872_s22 = smov %s730_s28 }
 0x164   : > { %s873_s23 = smov %s720_s25  ;;  %18 = sbr.rel (!%p16_p3) target bundleno = 5 (0x5), region = 75 }
 0x16b   :  { %465 = vsyncpa [#allocation4], 1 }
 0x16c   :  { %467 = vsyncpa [#allocation4 + $0x1], 1 }

</bundles_post_ra>
